<compile_context>
chip_gen: v7x
topology: tpu7x:2x2x1
jax: 0.10.0
libtpu: 0.0.40
codegen_flags: <defaults>
</compile_context>

<pallas_src>
import functools

import numpy as np
import jax
import jax.numpy as jnp
from jax import lax
from jax.experimental import pallas as pl
from jax.experimental.pallas import tpu as pltpu

_LANE = 128
_SUBLANE = 8            # f32 sublane tile
_LIVE_ACT_COPIES = 8    # conservative count of live f32 (bt, hidden) temporaries


def _round_up(x, m):
    return ((x + m - 1) // m) * m


def _tile_bytes(rows, cols, dtype):
    """Bytes one (rows, cols) array occupies as a VMEM tile (lane/sublane padded)."""
    item = np.dtype(dtype).itemsize
    sublane = (8 * 4) // item  # 8 for f32, 16 for bf16
    return _round_up(max(rows, 1), sublane) * _round_up(max(cols, 1), _LANE) * item


# -----------------------------------------------------------------------------
# One-time hardware / capability detection (cached, outside the hot path).
# -----------------------------------------------------------------------------

@functools.lru_cache(maxsize=None)
def _tpu_config():
    """Returns (vmem_limit_bytes, tile_budget_bytes, num_tensorcores)."""
    capacity = 64 << 20    # conservative fallback == v7x per-core VMEM
    num_cores = 2          # conservative fallback: assume megacore
    try:
        info = pltpu.get_tpu_info()
        cap = getattr(info, "vmem_capacity_bytes", None)
        if cap:
            capacity = int(cap)
        cores = None
        for name in ("num_tensorcores", "tensorcore_count", "num_cores"):
            val = getattr(info, name, None)
            if isinstance(val, int) and val > 0:
                cores = val
                break
        if cores is None:
            # Heuristic: 64 MiB-per-core VMEM chips (v7x) have 2 TensorCores.
            cores = 2 if capacity <= (64 << 20) else 1
        num_cores = cores
    except Exception:
        # Hardware query unavailable -> keep the conservative fallbacks above.
        pass
    vmem_limit = (capacity * 3) // 4     # ~96 MiB on v5e/v6e, ~48 MiB on v7x
    budget = vmem_limit - (4 << 20)      # headroom for compiler-internal scratch
    return vmem_limit, budget, num_cores


@functools.lru_cache(maxsize=None)
def _single_buffer_supported():
    """One-time capability probe on a tiny dedicated kernel (never wraps the
    real kernel): can grid-invariant blocks request pipeline_mode=pl.Buffered(1)?"""
    if not hasattr(pl, "Buffered"):
        return False
    try:
        spec = pl.BlockSpec((8, 128), lambda i: (0, 0), pipeline_mode=pl.Buffered(1))
    except TypeError:
        return False
    try:
        def _probe(x_ref, o_ref):
            o_ref[...] = x_ref[...] + 1.0

        fn = pl.pallas_call(
            _probe,
            grid=(2,),
            in_specs=[spec],
            out_specs=pl.BlockSpec((8, 128), lambda i: (i, 0)),
            out_shape=jax.ShapeDtypeStruct((16, 128), jnp.float32),
        )
        jax.jit(fn).lower(jnp.zeros((8, 128), jnp.float32)).compile()
        return True
    except Exception:
        return False


# -----------------------------------------------------------------------------
# Kernel
# -----------------------------------------------------------------------------

def _layernorm(x, gamma, beta, eps=1e-5):
    # PyTorch nn.LayerNorm: biased variance over last dim, eps inside sqrt.
    mean = jnp.mean(x, axis=-1, keepdims=True)
    var = jnp.mean((x - mean) ** 2, axis=-1, keepdims=True)
    return (x - mean) * lax.rsqrt(var + eps) * gamma + beta


def _gelu_exact(x):
    # PyTorch nn.GELU() default: exact erf-based GELU (kept for parity).
    return 0.5 * x * (1.0 + lax.erf(x * 0.7071067811865476))


def actor_critic_kernel(obs_ref, w1_ref, vecs_ref, w2_ref, wh_ref, bh_ref, out_ref):
    def mm(a, w_ref):
        w = w_ref[...]
        if w.dtype == jnp.bfloat16:          # opt-in bf16 MXU path (static)
            a = a.astype(jnp.bfloat16)
        return jnp.dot(a, w, preferred_element_type=jnp.float32)

    v = vecs_ref[...]                        # packed [b1,g1,be1,b2,g2,be2,0,0]
    b1, g1, be1 = v[0:1, :], v[1:2, :], v[2:3, :]
    b2, g2, be2 = v[3:4, :], v[4:5, :], v[5:6, :]

    x = obs_ref[...].astype(jnp.float32)

    # shared[0..2]: Linear(obs_dim, hidden) -> LayerNorm -> GELU
    h = mm(x, w1_ref) + b1
    h = _gelu_exact(_layernorm(h, g1, be1))

    # shared[3..5]: Linear(hidden, hidden) -> LayerNorm -> GELU
    h = mm(h, w2_ref) + b2
    h = _gelu_exact(_layernorm(h, g2, be2))

    # Fused heads [actor_mean | critic] in one matmul.  Output is NOT lane
    # padded (last dim = action_dim + 1) so HBM writeback stays minimal.
    out_ref[...] = (mm(h, wh_ref) + bh_ref[...]).astype(out_ref.dtype)


# -----------------------------------------------------------------------------
# Tiling / pallas_call construction
# -----------------------------------------------------------------------------

def _pick_batch_tile(B, obs_dim, hidden, head_n, weight_dtype, single_buffer,
                     budget, num_cores):
    param_bytes = (
        _tile_bytes(obs_dim, hidden, weight_dtype)      # w1
        + _tile_bytes(hidden, hidden, weight_dtype)     # w2
        + _tile_bytes(hidden, head_n, weight_dtype)     # fused head W
        + _tile_bytes(8, hidden, jnp.float32)           # packed bias/LN vectors
        + _tile_bytes(1, head_n, jnp.float32)           # fused head b
    )
    nbuf = 1 if single_buffer else 2
    avail = budget - nbuf * param_bytes
    per_row = 4 * (
        2 * _round_up(obs_dim, _LANE)                   # double-buffered obs tile
        + 2 * _round_up(head_n, _LANE)                  # double-buffered output tile
        + _LIVE_ACT_COPIES * _round_up(hidden, _LANE)   # live f32 activations
    )
    if avail < per_row * _SUBLANE:
        # TODO(synk): weight-resident design overflows VMEM for this hidden size
        # (notably on v7x's 64 MiB VMEM); add a K-tiled "arbitrary" grid axis for
        # w2 with an f32 accumulator, or switch weights to bf16.
        raise ValueError(
            f"ActorCritic weights ({nbuf} x {param_bytes} B) leave no room for a "
            f"batch tile within the {budget} B VMEM budget.")

    bt_max = max(_SUBLANE, (avail // per_row) // _SUBLANE * _SUBLANE)
    B8 = _round_up(B, _SUBLANE)
    steps = pl.cdiv(B8, min(bt_max, B8))
    if num_cores >= 2 and B8 >= 2 * _SUBLANE:
        # Give both v7x TensorCores work, with a balanced (core-multiple) step count.
        steps = _round_up(max(steps, 2), num_cores)
    # Rebalance: the smallest tile that still covers B in `steps` steps minimizes
    # final-tile padding and keeps per-core work equal.
    bt = _round_up(pl.cdiv(B8, steps), _SUBLANE)
    return min(bt, bt_max)


def _build_pallas_call(Bp, bt, obs_dim, hidden, head_n, vmem_limit, single_buffer):
    def invariant(shape):
        # Grid-invariant parameter blocks: single-buffer them when supported.
        kwargs = {"pipeline_mode": pl.Buffered(1)} if single_buffer else {}
        return pl.BlockSpec(shape, lambda i: (0,) * len(shape), **kwargs)

    in_specs = [
        pl.BlockSpec((bt, obs_dim), lambda i: (i, 0)),  # obs (batch-tiled)
        invariant((obs_dim, hidden)),                   # w1
        invariant((8, hidden)),                         # packed [b1,g1,be1,b2,g2,be2,0,0]
        invariant((hidden, hidden)),                    # w2
        invariant((hidden, head_n)),                    # fused head W = [wm | wc]
        invariant((1, head_n)),                         # fused head b = [bm | bc]
    ]
    out_specs = pl.BlockSpec((bt, head_n), lambda i: (i, 0))

    return pl.pallas_call(
        actor_critic_kernel,
        grid_spec=pltpu.PrefetchScalarGridSpec(
            num_scalar_prefetch=0,
            grid=(Bp // bt,),
            in_specs=in_specs,
            out_specs=out_specs,
        ),
        out_shape=jax.ShapeDtypeStruct((Bp, head_n), jnp.float32),
        compiler_params=pltpu.CompilerParams(
            dimension_semantics=("parallel",),
            vmem_limit_bytes=vmem_limit,
        ),
    )


# -----------------------------------------------------------------------------
# Public wrapper (jitted hot path, one-time parameter preparation)
# -----------------------------------------------------------------------------

def prepare_params(params, *, use_bf16_matmul=False):
    """One-time fusion/packing of parameters (hoisted out of the hot path).

    use_bf16_matmul=True stores the matmul weights in bf16 (MXU-native on
    v6e/v7x, halves weight HBM/VMEM bytes); LayerNorm/GELU and accumulation
    stay f32.  Default keeps f32 weights for exact PyTorch parity.
    """
    hidden = params["w1"].shape[1]
    wdt = jnp.bfloat16 if use_bf16_matmul else jnp.float32
    vecs = jnp.concatenate(
        [params["b1"], params["g1"], params["be1"],
         params["b2"], params["g2"], params["be2"],
         jnp.zeros((2, hidden), jnp.float32)],
        axis=0,
    ).astype(jnp.float32)
    wh = jnp.concatenate([params["wm"], params["wc"]], axis=1).astype(wdt)
    bh = jnp.concatenate([params["bm"], params["bc"]], axis=1).astype(jnp.float32)
    return {
        "w1": params["w1"].astype(wdt),
        "w2": params["w2"].astype(wdt),
        "wh": wh,
        "vecs": vecs,
        "bh": bh,
        # actor_logstd exists on the module but is unused by forward().
        "actor_logstd": params["actor_logstd"],
    }


@functools.partial(jax.jit, static_argnums=(2, 3, 4))
def _forward_impl(obs, prepared, bt, vmem_limit, single_buffer):
    B, obs_dim = obs.shape
    hidden = prepared["w1"].shape[1]
    head_n = prepared["wh"].shape[1]          # action_dim + 1
    action_dim = head_n - 1

    Bp = _round_up(B, bt)
    obs_in = obs if Bp == B else jnp.pad(obs, ((0, Bp - B), (0, 0)))

    call = _build_pallas_call(Bp, bt, obs_dim, hidden, head_n, vmem_limit,
                              single_buffer)
    out = call(obs_in, prepared["w1"], prepared["vecs"], prepared["w2"],
               prepared["wh"], prepared["bh"])
    out = out[:B]
    return out[:, :action_dim], out[:, action_dim:]


def actor_critic_forward(obs, prepared_params):
    """Forward pass -> (action_mean, value).  No host sync in the hot path."""
    B, obs_dim = obs.shape
    hidden = prepared_params["w1"].shape[1]
    head_n = prepared_params["wh"].shape[1]
    single_buffer = _single_buffer_supported()
    vmem_limit, budget, num_cores = _tpu_config()
    bt = _pick_batch_tile(B, obs_dim, hidden, head_n,
                          prepared_params["w1"].dtype, single_buffer,
                          budget, num_cores)
    return _forward_impl(obs, prepared_params, bt, vmem_limit, single_buffer)


# -----------------------------------------------------------------------------
# Test harness
# -----------------------------------------------------------------------------

def init_params(key, obs_dim, hidden_dim, action_dim):
    ks = jax.random.split(key, 6)
    scale = 0.1
    return {
        "w1": scale * jax.random.normal(ks[0], (obs_dim, hidden_dim), jnp.float32),
        "b1": scale * jax.random.normal(ks[1], (1, hidden_dim), jnp.float32),
        "g1": jnp.ones((1, hidden_dim), jnp.float32),    # LayerNorm weight = 1
        "be1": jnp.zeros((1, hidden_dim), jnp.float32),  # LayerNorm bias = 0
        "w2": scale * jax.random.normal(ks[2], (hidden_dim, hidden_dim), jnp.float32),
        "b2": scale * jax.random.normal(ks[3], (1, hidden_dim), jnp.float32),
        "g2": jnp.ones((1, hidden_dim), jnp.float32),
        "be2": jnp.zeros((1, hidden_dim), jnp.float32),
        "wm": scale * jax.random.normal(ks[4], (hidden_dim, action_dim), jnp.float32),
        "bm": jnp.zeros((1, action_dim), jnp.float32),
        "wc": scale * jax.random.normal(ks[5], (hidden_dim, 1), jnp.float32),
        "bc": jnp.zeros((1, 1), jnp.float32),
        "actor_logstd": jnp.zeros((action_dim,), jnp.float32),
    }


def reference_forward(obs, p):
    h = obs @ p["w1"] + p["b1"]
    h = _layernorm(h, p["g1"], p["be1"])
    h = jax.nn.gelu(h, approximate=False)
    h = h @ p["w2"] + p["b2"]
    h = _layernorm(h, p["g2"], p["be2"])
    h = jax.nn.gelu(h, approximate=False)
    return h @ p["wm"] + p["bm"], h @ p["wc"] + p["bc"]


if __name__ == "__main__":
    B, obs_dim, hidden_dim, action_dim = 8, 16, 32, 4

    key = jax.random.PRNGKey(0)
    pkey, okey = jax.random.split(key)
    params = init_params(pkey, obs_dim, hidden_dim, action_dim)
    obs = jax.random.normal(okey, (B, obs_dim), jnp.float32)

    ref_mean, ref_value = reference_forward(obs, params)

    # Exact-parity f32 path.
    prepared = prepare_params(params)
    action_mean, value = actor_critic_forward(obs, prepared)
    jax.block_until_ready((action_mean, value))
    assert action_mean.shape == (B, action_dim)
    assert value.shape == (B, 1)
    assert jnp.allclose(action_mean, ref_mean, atol=1e-4, rtol=1e-4)
    assert jnp.allclose(value, ref_value, atol=1e-4, rtol=1e-4)

    # Batch-padding path (B not a multiple of the sublane/tile size).
    obs_odd = obs[:6]
    m_odd, v_odd = actor_critic_forward(obs_odd, prepared)
    jax.block_until_ready((m_odd, v_odd))
    assert m_odd.shape == (6, action_dim) and v_odd.shape == (6, 1)
    assert jnp.allclose(m_odd, ref_mean[:6], atol=1e-4, rtol=1e-4)
    assert jnp.allclose(v_odd, ref_value[:6], atol=1e-4, rtol=1e-4)

    # Opt-in bf16 MXU path (looser parity).
    prepared_bf16 = prepare_params(params, use_bf16_matmul=True)
    m_bf, v_bf = actor_critic_forward(obs, prepared_bf16)
    jax.block_until_ready((m_bf, v_bf))
    assert jnp.allclose(m_bf, ref_mean, atol=5e-2, rtol=5e-2)
    assert jnp.allclose(v_bf, ref_value, atol=5e-2, rtol=5e-2)

    print("KERNEL_OK")
</pallas_src>

<mosaic_0001>
module attributes {stable_mosaic.version = 11 : i64} {
  func.func @actor_critic_kernel(%arg0: i32, %arg1: memref<8x16xf32, #tpu.memory_space<vmem>>, %arg2: memref<16x32xf32, #tpu.memory_space<vmem>>, %arg3: memref<8x32xf32, #tpu.memory_space<vmem>>, %arg4: memref<32x32xf32, #tpu.memory_space<vmem>>, %arg5: memref<32x5xf32, #tpu.memory_space<vmem>>, %arg6: memref<1x5xf32, #tpu.memory_space<vmem>>, %arg7: memref<8x5xf32, #tpu.memory_space<vmem>>) attributes {dimension_semantics = [#tpu.dimension_semantics<parallel>], iteration_bounds = array<i64: 1>, scalar_prefetch = 0 : i64, scratch_operands = 0 : i64, tpu.core_type = #tpu.core_type<tc>, window_params = [{transform_indices = @transform_0, window_bounds = array<i64: 8, 16>}, {pipeline_mode = #tpu.pipeline_mode<synchronous>, transform_indices = @transform_1, window_bounds = array<i64: 16, 32>}, {pipeline_mode = #tpu.pipeline_mode<synchronous>, transform_indices = @transform_2, window_bounds = array<i64: 8, 32>}, {pipeline_mode = #tpu.pipeline_mode<synchronous>, transform_indices = @transform_3, window_bounds = array<i64: 32, 32>}, {pipeline_mode = #tpu.pipeline_mode<synchronous>, transform_indices = @transform_4, window_bounds = array<i64: 32, 5>}, {pipeline_mode = #tpu.pipeline_mode<synchronous>, transform_indices = @transform_5, window_bounds = array<i64: 1, 5>}, {transform_indices = @transform_6, window_bounds = array<i64: 8, 5>}]} {
    %c0 = arith.constant 0 : index
    %c0_0 = arith.constant 0 : index
    %0 = vector.load %arg3[%c0, %c0_0] : memref<8x32xf32, #tpu.memory_space<vmem>>, vector<8x32xf32>
    %1 = vector.extract_strided_slice %0 {offsets = [0, 0], sizes = [1, 32], strides = [1, 1]} : vector<8x32xf32> to vector<1x32xf32>
    %2 = vector.extract_strided_slice %0 {offsets = [1, 0], sizes = [1, 32], strides = [1, 1]} : vector<8x32xf32> to vector<1x32xf32>
    %3 = vector.extract_strided_slice %0 {offsets = [2, 0], sizes = [1, 32], strides = [1, 1]} : vector<8x32xf32> to vector<1x32xf32>
    %4 = vector.extract_strided_slice %0 {offsets = [3, 0], sizes = [1, 32], strides = [1, 1]} : vector<8x32xf32> to vector<1x32xf32>
    %5 = vector.extract_strided_slice %0 {offsets = [4, 0], sizes = [1, 32], strides = [1, 1]} : vector<8x32xf32> to vector<1x32xf32>
    %6 = vector.extract_strided_slice %0 {offsets = [5, 0], sizes = [1, 32], strides = [1, 1]} : vector<8x32xf32> to vector<1x32xf32>
    %c0_1 = arith.constant 0 : index
    %c0_2 = arith.constant 0 : index
    %7 = vector.load %arg1[%c0_1, %c0_2] : memref<8x16xf32, #tpu.memory_space<vmem>>, vector<8x16xf32>
    %c0_3 = arith.constant 0 : index
    %c0_4 = arith.constant 0 : index
    %8 = vector.load %arg2[%c0_3, %c0_4] : memref<16x32xf32, #tpu.memory_space<vmem>>, vector<16x32xf32>
    %cst = arith.constant dense<0.000000e+00> : vector<8x32xf32>
    %9 = tpu.matmul %7, %8, %cst {dimension_numbers = #tpu.dot_dimension_numbers<[1], [0], [0], [1], [0, 0, 1, 1], [], []>} : vector<8x16xf32>, vector<16x32xf32>, vector<8x32xf32> -> vector<8x32xf32>
    %10 = vector.broadcast %1 : vector<1x32xf32> to vector<8x32xf32>
    %11 = arith.addf %9, %10 : vector<8x32xf32>
    %cst_5 = arith.constant dense<0.000000e+00> : vector<8xf32>
    %12 = vector.multi_reduction <add>, %11, %cst_5 [1] : vector<8x32xf32> to vector<8xf32>
    %13 = vector.shape_cast %12 : vector<8xf32> to vector<8x1xf32>
    %cst_6 = arith.constant 3.200000e+01 : f32
    %14 = vector.broadcast %cst_6 : f32 to vector<8x1xf32>
    %15 = arith.divf %13, %14 : vector<8x1xf32>
    %16 = vector.broadcast %15 : vector<8x1xf32> to vector<8x32xf32>
    %17 = arith.subf %11, %16 : vector<8x32xf32>
    %18 = arith.mulf %17, %17 : vector<8x32xf32>
    %cst_7 = arith.constant dense<0.000000e+00> : vector<8xf32>
    %19 = vector.multi_reduction <add>, %18, %cst_7 [1] : vector<8x32xf32> to vector<8xf32>
    %20 = vector.shape_cast %19 : vector<8xf32> to vector<8x1xf32>
    %cst_8 = arith.constant 3.200000e+01 : f32
    %21 = vector.broadcast %cst_8 : f32 to vector<8x1xf32>
    %22 = arith.divf %20, %21 : vector<8x1xf32>
    %23 = vector.broadcast %15 : vector<8x1xf32> to vector<8x32xf32>
    %24 = arith.subf %11, %23 : vector<8x32xf32>
    %cst_9 = arith.constant 9.99999974E-6 : f32
    %25 = vector.broadcast %cst_9 : f32 to vector<8x1xf32>
    %26 = arith.addf %22, %25 : vector<8x1xf32>
    %27 = math.rsqrt %26 : vector<8x1xf32>
    %28 = vector.broadcast %27 : vector<8x1xf32> to vector<8x32xf32>
    %29 = arith.mulf %24, %28 : vector<8x32xf32>
    %30 = vector.broadcast %2 : vector<1x32xf32> to vector<8x32xf32>
    %31 = arith.mulf %29, %30 : vector<8x32xf32>
    %32 = vector.broadcast %3 : vector<1x32xf32> to vector<8x32xf32>
    %33 = arith.addf %31, %32 : vector<8x32xf32>
    %cst_10 = arith.constant 5.000000e-01 : f32
    %34 = vector.broadcast %cst_10 : f32 to vector<8x32xf32>
    %35 = arith.mulf %34, %33 : vector<8x32xf32>
    %cst_11 = arith.constant 0.707106769 : f32
    %36 = vector.broadcast %cst_11 : f32 to vector<8x32xf32>
    %37 = arith.mulf %33, %36 : vector<8x32xf32>
    %38 = math.erf %37 : vector<8x32xf32>
    %cst_12 = arith.constant 1.000000e+00 : f32
    %39 = vector.broadcast %cst_12 : f32 to vector<8x32xf32>
    %40 = arith.addf %39, %38 : vector<8x32xf32>
    %41 = arith.mulf %35, %40 : vector<8x32xf32>
    %c0_13 = arith.constant 0 : index
    %c0_14 = arith.constant 0 : index
    %42 = vector.load %arg4[%c0_13, %c0_14] : memref<32x32xf32, #tpu.memory_space<vmem>>, vector<32x32xf32>
    %cst_15 = arith.constant dense<0.000000e+00> : vector<8x32xf32>
    %43 = tpu.matmul %41, %42, %cst_15 {dimension_numbers = #tpu.dot_dimension_numbers<[1], [0], [0], [1], [0, 0, 1, 1], [], []>} : vector<8x32xf32>, vector<32x32xf32>, vector<8x32xf32> -> vector<8x32xf32>
    %44 = vector.broadcast %4 : vector<1x32xf32> to vector<8x32xf32>
    %45 = arith.addf %43, %44 : vector<8x32xf32>
    %cst_16 = arith.constant dense<0.000000e+00> : vector<8xf32>
    %46 = vector.multi_reduction <add>, %45, %cst_16 [1] : vector<8x32xf32> to vector<8xf32>
    %47 = vector.shape_cast %46 : vector<8xf32> to vector<8x1xf32>
    %cst_17 = arith.constant 3.200000e+01 : f32
    %48 = vector.broadcast %cst_17 : f32 to vector<8x1xf32>
    %49 = arith.divf %47, %48 : vector<8x1xf32>
    %50 = vector.broadcast %49 : vector<8x1xf32> to vector<8x32xf32>
    %51 = arith.subf %45, %50 : vector<8x32xf32>
    %52 = arith.mulf %51, %51 : vector<8x32xf32>
    %cst_18 = arith.constant dense<0.000000e+00> : vector<8xf32>
    %53 = vector.multi_reduction <add>, %52, %cst_18 [1] : vector<8x32xf32> to vector<8xf32>
    %54 = vector.shape_cast %53 : vector<8xf32> to vector<8x1xf32>
    %cst_19 = arith.constant 3.200000e+01 : f32
    %55 = vector.broadcast %cst_19 : f32 to vector<8x1xf32>
    %56 = arith.divf %54, %55 : vector<8x1xf32>
    %57 = vector.broadcast %49 : vector<8x1xf32> to vector<8x32xf32>
    %58 = arith.subf %45, %57 : vector<8x32xf32>
    %cst_20 = arith.constant 9.99999974E-6 : f32
    %59 = vector.broadcast %cst_20 : f32 to vector<8x1xf32>
    %60 = arith.addf %56, %59 : vector<8x1xf32>
    %61 = math.rsqrt %60 : vector<8x1xf32>
    %62 = vector.broadcast %61 : vector<8x1xf32> to vector<8x32xf32>
    %63 = arith.mulf %58, %62 : vector<8x32xf32>
    %64 = vector.broadcast %5 : vector<1x32xf32> to vector<8x32xf32>
    %65 = arith.mulf %63, %64 : vector<8x32xf32>
    %66 = vector.broadcast %6 : vector<1x32xf32> to vector<8x32xf32>
    %67 = arith.addf %65, %66 : vector<8x32xf32>
    %cst_21 = arith.constant 5.000000e-01 : f32
    %68 = vector.broadcast %cst_21 : f32 to vector<8x32xf32>
    %69 = arith.mulf %68, %67 : vector<8x32xf32>
    %cst_22 = arith.constant 0.707106769 : f32
    %70 = vector.broadcast %cst_22 : f32 to vector<8x32xf32>
    %71 = arith.mulf %67, %70 : vector<8x32xf32>
    %72 = math.erf %71 : vector<8x32xf32>
    %cst_23 = arith.constant 1.000000e+00 : f32
    %73 = vector.broadcast %cst_23 : f32 to vector<8x32xf32>
    %74 = arith.addf %73, %72 : vector<8x32xf32>
    %75 = arith.mulf %69, %74 : vector<8x32xf32>
    %c0_24 = arith.constant 0 : index
    %c0_25 = arith.constant 0 : index
    %76 = vector.load %arg5[%c0_24, %c0_25] : memref<32x5xf32, #tpu.memory_space<vmem>>, vector<32x5xf32>
    %cst_26 = arith.constant dense<0.000000e+00> : vector<8x5xf32>
    %77 = tpu.matmul %75, %76, %cst_26 {dimension_numbers = #tpu.dot_dimension_numbers<[1], [0], [0], [1], [0, 0, 1, 1], [], []>} : vector<8x32xf32>, vector<32x5xf32>, vector<8x5xf32> -> vector<8x5xf32>
    %c0_27 = arith.constant 0 : index
    %c0_28 = arith.constant 0 : index
    %78 = vector.load %arg6[%c0_27, %c0_28] : memref<1x5xf32, #tpu.memory_space<vmem>>, vector<1x5xf32>
    %79 = vector.broadcast %78 : vector<1x5xf32> to vector<8x5xf32>
    %80 = arith.addf %77, %79 : vector<8x5xf32>
    %c0_29 = arith.constant 0 : index
    %c0_30 = arith.constant 0 : index
    %81 = vector.load %arg7[%c0_29, %c0_30] : memref<8x5xf32, #tpu.memory_space<vmem>>, vector<8x5xf32>
    tpu.vector_store %arg7[%c0_29, %c0_30], %80 {strides = array<i32>} : memref<8x5xf32, #tpu.memory_space<vmem>>, vector<8x5xf32>,
    return
  }
  func.func @transform_0(%arg0: i32) -> (i32, i32) {
    %c0_i32 = arith.constant 0 : i32
    %c0_i32_0 = arith.constant 0 : i32
    return %arg0, %c0_i32 : i32, i32
  }
  func.func @transform_1(%arg0: i32) -> (i32, i32) {
    %c0_i32 = arith.constant 0 : i32
    %c0_i32_0 = arith.constant 0 : i32
    %c0_i32_1 = arith.constant 0 : i32
    return %c0_i32, %c0_i32_0 : i32, i32
  }
  func.func @transform_2(%arg0: i32) -> (i32, i32) {
    %c0_i32 = arith.constant 0 : i32
    %c0_i32_0 = arith.constant 0 : i32
    %c0_i32_1 = arith.constant 0 : i32
    return %c0_i32, %c0_i32_0 : i32, i32
  }
  func.func @transform_3(%arg0: i32) -> (i32, i32) {
    %c0_i32 = arith.constant 0 : i32
    %c0_i32_0 = arith.constant 0 : i32
    %c0_i32_1 = arith.constant 0 : i32
    return %c0_i32, %c0_i32_0 : i32, i32
  }
  func.func @transform_4(%arg0: i32) -> (i32, i32) {
    %c0_i32 = arith.constant 0 : i32
    %c0_i32_0 = arith.constant 0 : i32
    %c0_i32_1 = arith.constant 0 : i32
    return %c0_i32, %c0_i32_0 : i32, i32
  }
  func.func @transform_5(%arg0: i32) -> (i32, i32) {
    %c0_i32 = arith.constant 0 : i32
    %c0_i32_0 = arith.constant 0 : i32
    %c0_i32_1 = arith.constant 0 : i32
    return %c0_i32, %c0_i32_0 : i32, i32
  }
  func.func @transform_6(%arg0: i32) -> (i32, i32) {
    %c0_i32 = arith.constant 0 : i32
    %c0_i32_0 = arith.constant 0 : i32
    return %arg0, %c0_i32 : i32, i32
  }
}

</mosaic_0001>

<bundles_post_ra>
// kernel: _forward_impl.1
= control target key start
LH: loop header
LB: loop body
LE: loop exit
PB: predicated region body
PF: predicated region fallthrough
CT: control target
= control target key end

     0   :  { %11 = vsyncpa [#allocation3], 0  ;;  %s609_s0 = inlined_call_operand.hbm [shape: f32[8,16], index: 0, kind: input, shape index: {}]   ;;  %s610_s1 = inlined_call_operand.vmem [shape: f32[16,32], index: 1, kind: input, shape index: {}]   ;;  %s611_s2 = inlined_call_operand.hbm [shape: f32[8,32], index: 2, kind: input, shape index: {}]   ;;  %s612_s3 = inlined_call_operand.vmem [shape: f32[32,32], index: 3, kind: input, shape index: {}]   ;;  %s613_s4 = inlined_call_operand.vmem [shape: f32[32,5], index: 4, kind: input, shape index: {}]   ;;  %s614_s5 = inlined_call_operand.vmem [shape: f32[1,5], index: 5, kind: input, shape index: {}]   ;;  %s615_s6 = inlined_call_operand.vmem [shape: f32[8,5], index: 6, kind: output, shape index: {}]  }
   0x1   :  { %12 = vsyncpa [#allocation5], 0  ;;  %s482_s21 = smov [#allocation2]   ;;  %s483_s23 = smov [#allocation4]  }
   0x2   :  { %s19_s22 = sshll.u32 %s482_s21, 4  ;;  %s31_s24 = sshll.u32 %s483_s23, 4  ;;  %s20_s22 = int_to_ptr.vmem [resolvable:$true] %s19_s22  ;;  %s32_s24 = int_to_ptr.vmem [resolvable:$true] %s31_s24 }
   0x3   :  { %s434_s27 = scalar_lea.hbm %s609_s0, 128 }
   0x4   :  { %p435_p0 = scmp.ne.s32.totalorder %s609_s0, %s434_s27  ;;  %p438_p1 = scmp.lt.u32.totalorder %s434_s27, %s609_s0 }
   0x6   :  { %p440_p2 = pnand %p438_p1, %p435_p0 }
   0x8   :  { %443 = shalt.err (!%p440_p2)
}
   0x9   :  { %s444_s8 = scalar_lea.vmem %s20_s22, 128  ;;  %p449_p4 = scmp.lt.s32.totalorder %s20_s22, %s20_s22 }
   0xa   :  { %p445_p3 = scmp.ne.s32.totalorder %s20_s22, %s444_s8  ;;  %p450_p5 = scmp.lt.s32.totalorder %s444_s8, %s444_s8 }
   0xc   :  { %p451_p6 = por %p450_p5, %p449_p4 }
   0xe   :  { %p452_p7 = pnand %p451_p6, %p445_p3 }
  0x10   :  { %455 = shalt.err (!%p452_p7)
}
  0x11   :  { %22 = dma.hbm_to_vmem [thread:$0]  %s609_s0, 128, %s20_s22, [#allocation3]  }
  0x12   :  { %s456_s13 = scalar_lea.hbm %s611_s2, 128 }
  0x13   :  { %p457_p8 = scmp.ne.s32.totalorder %s611_s2, %s456_s13  ;;  %p460_p9 = scmp.lt.u32.totalorder %s456_s13, %s611_s2 }
  0x15   :  { %p462_p10 = pnand %p460_p9, %p457_p8 }
  0x17   :  { %465 = shalt.err (!%p462_p10)
}
  0x18   :  { %s466_s18 = scalar_lea.vmem %s32_s24, 128  ;;  %p471_p12 = scmp.lt.s32.totalorder %s32_s24, %s32_s24 }
  0x19   :  { %p467_p11 = scmp.ne.s32.totalorder %s32_s24, %s466_s18  ;;  %p472_p13 = scmp.lt.s32.totalorder %s466_s18, %s466_s18 }
  0x1b   :  { %p473_p0 = por %p472_p13, %p471_p12 }
  0x1d   :  { %p474_p1 = pnand %p473_p0, %p467_p11 }
  0x1f   :  { %477 = shalt.err (!%p474_p1)
}
  0x20   :  { %34 = dma.hbm_to_vmem [thread:$0]  %s611_s2, 128, %s32_s24, [#allocation5]  }
  0x21   :  { %478 = dma.done.wait [#allocation3], 128  }
  0x22   :  { %479 = vsyncadd [#allocation3], 4294967168 }
  0x23   :  { %480 = dma.done.wait [#allocation5], 128  }
  0x24   :  { %481 = vsyncadd [#allocation5], 4294967168  ;;  %v484_v0 = vmov 0.0|0.0   ;;  %vm485_vm0 = vmmov 0   ;;  %v486_v1 = vmov 0.0   ;;  %v49_v2 = vld [vmem:[%s610_s1] sm:$0xff]  ;;  %v51_v6 = vlaneseq }
  0x25   :  { %406 = vmatprep.subr.bf16.mxu0 %v484_v0  ;;  %381 = vmatprep.mubr.msk.f32.mxu0 %vm485_vm0, %v486_v1  ;;  %v50_v3 = vld [vmem:[%s610_s1 + $0x8] sm:$0xff]  ;;  %v48_v5 = vld [vmem:[#allocation2] sm:$0xff]  ;;  %vm55_vm1 = vcmask 130048   ;;  %vm129_vm2 = vcmask 261120   ;;  %v161_v22 = vld [vmem:[%s612_s3 + $0x10] sm:$0xff]  ;;  %vm352_vm3 = vcmask 39936  }
  0x26   :  { %409 = vmatprep.subr.bf16.mxu1 %v484_v0  ;;  %392 = vmatprep.mubr.msk.f32.mxu1 %vm485_vm0, %v486_v1  ;;  %v407_v4 = vpack.c.bf16 %v50_v3, %v49_v2  ;;  %v555_v7 = vshrl.u32 %v51_v6, 7  ;;  %v558_v9 = vld [vmem:[#allocation4] sm:$0xff]  ;;  %v159_v20 = vld [vmem:[%s612_s3] sm:$0xff]  ;;  %v162_v24 = vld [vmem:[%s612_s3 + $0x18] sm:$0xff] }
  0x27   :  { %v160_v21 = vld [vmem:[%s612_s3 + $0x8] sm:$0xff]  ;;  %v413_v25 = vpack.c.bf16 %v162_v24, %v161_v22  ;;  %v268_v53 = vld [vmem:[%s613_s4] sm:$0xff]  ;;  %v270_v55 = vld [vmem:[%s613_s4 + $0x10] sm:$0xff] }
  0x28   :  { %408 = vmatpush3.bf16.msra.mxu0 %v407_v4  ;;  %v53_v8 = vsub.s32 0, %v555_v7  ;;  %v410_v23 = vpack.c.bf16 %v160_v21, %v159_v20  ;;  %v146_v29 = vsub.s32 1, %v555_v7  ;;  %v151_v30 = vsub.s32 2, %v555_v7  ;;  %v269_v54 = vld [vmem:[%s613_s4 + $0x8] sm:$0xff]  ;;  %v271_v57 = vld [vmem:[%s613_s4 + $0x18] sm:$0xff] }
  0x29   :  { %415 = vmatprep.subr.bf16.mxu0 %v484_v0  ;;  %v165_v42 = vsub.s32 3, %v555_v7  ;;  %v416_v56 = vpack.c.bf16 %v269_v54, %v268_v53  ;;  %v419_v58 = vpack.c.bf16 %v271_v57, %v270_v55  ;;  %v255_v62 = vsub.s32 4, %v555_v7 }
  0x2a   :  { %v54_v10 = vrot.slane %v558_v9, %v53_v8  ;;  %411 = vmatpush3.bf16.msra.mxu1 %v410_v23  ;;  %v147_v31 = vrot.slane %v558_v9, %v146_v29  ;;  %v152_v34 = vrot.slane %v558_v9, %v151_v30  ;;  %v260_v63 = vsub.s32 5, %v555_v7  ;;  %v362_v7 = vld [vmem:[%s614_s5] ss:$0 sm:$0xff] }
  0x2b   :  { %382 = vmatmul.mubr.msk.f32.vlgmr.msra.gmra.mrb[0].mxu0 %vm55_vm1, %v48_v5  ;;  %412 = vmatprep.subr.bf16.mxu1 %v484_v0  ;;  %v166_v43 = vrot.slane %v558_v9, %v165_v42 }
  0x2c   :  { %403 = vmatprep.mubr.msk.f32.mxu0 %vm485_vm0, %v486_v1  ;;  %417 = vmatpush3.bf16.msra.mxu0 %v416_v56  ;;  %v256_v1 = vrot.slane %v558_v9, %v255_v62  ;;  %v261_v3 = vrot.slane %v558_v9, %v260_v63 }
  0x2d   :  { %418 = vmatprep.subr.bf16.mxu0 %v484_v0 }
  0x2e   :  { %414 = vmatpush3.bf16.msra.mxu1 %v413_v25 }
  0x30   :  { %420 = vmatpush3.bf16.msra.mxu0 %v419_v58 }
  0xfe   :  { %v125_v11 = vpop.f32.mrb[0].mxu0 }
  0xff   :  { %v126_v12 = vadd.f32 %v125_v11, %v54_v10  ;;  %v383_v13 = vpop.f32.mrb[1].mxu0 }
 0x101   :  { %v130_v14 = vsel %vm129_vm2, %v126_v12, 0.0 }
 0x102   :  { %131 = vadd.xlane.f32.xlu0 %v130_v14 }
 0x18f   :  { %v132_v15 = vpop.xlane.xlu0 %131 }
 0x190   :  { %v134_v16 = vmul.f32 0.03125, %v132_v15 }
 0x192   :  { %v135_v17 = vsub.f32 %v126_v12, %v134_v16 }
 0x194   :  { %v136_v18 = vmul.f32 %v135_v17, %v135_v17 }
 0x196   :  { %v137_v19 = vsel %vm129_vm2, %v136_v18, 0.0 }
 0x197   :  { %138 = vadd.xlane.f32.xlu0 %v137_v19 }
 0x224   :  { %v139_v26 = vpop.xlane.xlu0 %138 }
 0x225   :  { %v140_v27 = vmul.f32 0.03125, %v139_v26 }
 0x227   :  { %v141_v28 = vadd.f32 1e-05, %v140_v27 }
 0x229   :  { %426 = vrsqrt.f32 %v141_v28 }
 0x233   :  { %v427_v32 = vpop.eup %426 }
 0x234   :  { %v143_v33 = vmul.f32 %v427_v32, %v135_v17 }
 0x236   :  { %v148_v35 = vmul.f32 %v147_v31, %v143_v33 }
 0x238   :  { %v153_v36 = vadd.f32 %v152_v34, %v148_v35 }
 0x23a   :  { %v155_v37 = vmul.f32 0.70710677, %v153_v36  ;;  %v154_v39 = vmul.f32 0.5, %v153_v36 }
 0x23c   :  { %428 = verf.f32 %v155_v37 }
 0x246   :  { %v429_v38 = vpop.eup %428 }
 0x247   :  { %v157_v40 = vadd.f32 1.0, %v429_v38 }
 0x249   :  { %v158_v41 = vmul.f32 %v157_v40, %v154_v39 }
 0x24b   :  { %393 = vmatmul.mubr.msk.f32.vlgmr.msra.gmra.mrb[0].mxu1 %vm129_vm2, %v158_v41 }
 0x31e   :  { %v236_v44 = vpop.f32.mrb[0].mxu1 }
 0x31f   :  { %v237_v45 = vadd.f32 %v236_v44, %v166_v43  ;;  %v394_v46 = vpop.f32.mrb[1].mxu1 }
 0x321   :  { %v240_v47 = vsel %vm129_vm2, %v237_v45, 0.0 }
 0x322   :  { %241 = vadd.xlane.f32.xlu1 %v240_v47 }
 0x3af   :  { %v242_v48 = vpop.xlane.xlu1 %241 }
 0x3b0   :  { %v243_v49 = vmul.f32 0.03125, %v242_v48 }
 0x3b2   :  { %v244_v50 = vsub.f32 %v237_v45, %v243_v49 }
 0x3b4   :  { %v245_v51 = vmul.f32 %v244_v50, %v244_v50 }
 0x3b6   :  { %v246_v52 = vsel %vm129_vm2, %v245_v51, 0.0 }
 0x3b7   :  { %247 = vadd.xlane.f32.xlu1 %v246_v52 }
 0x444   :  { %v248_v59 = vpop.xlane.xlu1 %247 }
 0x445   :  { %v249_v60 = vmul.f32 0.03125, %v248_v59 }
 0x447   :  { %v250_v61 = vadd.f32 1e-05, %v249_v60 }
 0x449   :  { %430 = vrsqrt.f32 %v250_v61 }
 0x453   :  { %v431_v2 = vpop.eup %430 }
 0x454   :  { %v252_v4 = vmul.f32 %v431_v2, %v244_v50 }
 0x456   :  { %v257_v5 = vmul.f32 %v256_v1, %v252_v4 }
 0x458   :  { %v262_v6 = vadd.f32 %v261_v3, %v257_v5 }
 0x45a   :  { %v264_v8 = vmul.f32 0.70710677, %v262_v6  ;;  %v263_v10 = vmul.f32 0.5, %v262_v6 }
 0x45c   :  { %432 = verf.f32 %v264_v8 }
 0x466   :  { %v433_v0 = vpop.eup %432 }
 0x467   :  { %v266_v11 = vadd.f32 1.0, %v433_v0 }
 0x469   :  { %v267_v12 = vmul.f32 %v266_v11, %v263_v10 }
 0x46b   :  { %404 = vmatmul.mubr.msk.f32.vlgmr.msra.gmra.mrb[2].mxu0 %vm129_vm2, %v267_v12 }
 0x53e   :  { %v348_v13 = vpop.f32.mrb[2].mxu0 }
 0x53f   :  { %v349_v14 = vadd.f32 %v362_v7, %v348_v13  ;;  %v405_v15 = vpop.f32.mrb[3].mxu0 }
 0x541   :  { %353 = vst.msk [vmem:[%s615_s6] sm:$0xff] %vm352_vm3, %v349_v14 }
 0x542   :  { %358 = vsyncpa [#allocation3], 1 }
 0x543   :  { %359 = vsyncpa [#allocation5], 1 }

</bundles_post_ra>
